<compile_context>
chip_gen: v7x
topology: tpu7x:2x2x1
jax: 0.10.0
libtpu: 0.0.40
codegen_flags: <defaults>
</compile_context>

<pallas_src>
import functools

import jax
import jax.numpy as jnp
from jax.experimental import pallas as pl
from jax.experimental.pallas import tpu as pltpu


BATCH = 2
CHANNELS = 4
HEIGHT = 16
WIDTH = 16
EPS = 1e-6


def _layernorm2d_kernel(eps, x_ref, wb_ref, o_ref):
    # x_ref: (bb, C, t_hw)   wb_ref: (2, C, 1)   o_ref: (bb, C, t_hw)
    x = x_ref[...].astype(jnp.float32)

    # One-pass stats: both channel (sublane) reductions are independent and
    # can be issued back-to-back on the XLU.
    u = jnp.mean(x, axis=1, keepdims=True)           # (bb, 1, t_hw)  E[x]
    m2 = jnp.mean(x * x, axis=1, keepdims=True)      # (bb, 1, t_hw)  E[x^2]
    s = jnp.maximum(m2 - u * u, 0.0)                 # biased var, clamp cancellation
    inv = jax.lax.rsqrt(s + eps)                     # EUP slot, keeps VALU free

    w = wb_ref[0:1]                                  # (1, C, 1)
    b = wb_ref[1:2]                                  # (1, C, 1)
    o_ref[...] = (w * ((x - u) * inv) + b).astype(o_ref.dtype)


def pack_affine(weight, bias):
    """Pack per-channel (C,) weight & bias into the (2, C, 1) f32 layout the
    kernel expects.  Do this once, outside the hot path."""
    C = weight.shape[0]
    return jnp.stack(
        [weight.astype(jnp.float32), bias.astype(jnp.float32)]
    ).reshape(2, C, 1)


def _pick_block(B, C, hw, itemsize):
    """Choose (block_b, tile_hw).

    Small tensors: one block -> one grid step (no per-step overhead).
    Large tensors: 1 batch row per block, lane tile a multiple of 128
    (>= 512 preferred for HBM roofline), capped so (in + out) double-buffered
    stays well under the 32 MiB scoped VMEM default (and v7x's 64 MiB VMEM).
    """
    budget = 4 * 1024 * 1024  # bytes per x block => <= ~16 MiB VMEM with dbl-buffered in+out
    if B * C * hw * itemsize <= budget:
        return B, hw
    tile_hw = hw
    if hw % 128 == 0:
        for cand in (4096, 2048, 1024, 512, 256, 128):
            if hw % cand == 0 and C * cand * itemsize <= budget:
                tile_hw = cand
                break
    return 1, tile_hw


def layer_norm_2d(x, wb, eps=EPS):
    """x: (B, C, H, W) f32 or bf16; wb: packed (2, C, 1) f32 from pack_affine.

    Returns (B, C, H, W) in x.dtype (internal math is f32)."""
    B, C, H, W = x.shape
    hw = H * W

    # Lane-dense presentation: spatial dims flattened onto the lane axis, the
    # channel reduction runs over the small sublane axis.
    x3 = x.reshape(B, C, hw)

    block_b, tile_hw = _pick_block(B, C, hw, x.dtype.itemsize)
    grid = (B // block_b, hw // tile_hw)   # (1, 1) at the toy shape

    kernel = functools.partial(_layernorm2d_kernel, eps)

    out = pl.pallas_call(
        kernel,
        out_shape=jax.ShapeDtypeStruct((B, C, hw), x.dtype),
        grid_spec=pltpu.PrefetchScalarGridSpec(
            num_scalar_prefetch=0,
            grid=grid,
            in_specs=[
                pl.BlockSpec((block_b, C, tile_hw), lambda i, j: (i, 0, j)),  # x
                pl.BlockSpec((2, C, 1), lambda i, j: (0, 0, 0)),              # packed w/b
            ],
            out_specs=pl.BlockSpec((block_b, C, tile_hw), lambda i, j: (i, 0, j)),
        ),
        compiler_params=pltpu.CompilerParams(
            # Both axes are independent (reduction is over C, inside a block):
            # lets Mosaic shard across v7x's two TensorCores at real sizes.
            dimension_semantics=("parallel", "parallel"),
        ),
    )(x3, wb)

    return out.reshape(B, C, H, W)


def _ref_layer_norm_2d(x, weight, bias, eps=EPS):
    """Pure-JAX reference mirroring the PyTorch forward (two-pass)."""
    u = x.mean(axis=1, keepdims=True)
    s = ((x - u) ** 2).mean(axis=1, keepdims=True)
    xn = (x - u) / jnp.sqrt(s + eps)
    return weight[None, :, None, None] * xn + bias[None, :, None, None]


if __name__ == "__main__":
    key = jax.random.PRNGKey(0)
    kx, kw, kb = jax.random.split(key, 3)

    x = jax.random.normal(kx, (BATCH, CHANNELS, HEIGHT, WIDTH), dtype=jnp.float32)
    # Module init is weight=ones, bias=zeros; use non-trivial values so the
    # affine path is actually exercised.
    weight = 1.0 + 0.1 * jax.random.normal(kw, (CHANNELS,), dtype=jnp.float32)
    bias = 0.1 * jax.random.normal(kb, (CHANNELS,), dtype=jnp.float32)

    wb = pack_affine(weight, bias)   # packed once, outside the hot path

    out = layer_norm_2d(x, wb)
    out = jax.block_until_ready(out)

    ref = _ref_layer_norm_2d(x, weight, bias)
    assert out.shape == (BATCH, CHANNELS, HEIGHT, WIDTH)
    assert jnp.allclose(out, ref, atol=1e-4, rtol=1e-4), "mismatch vs reference"

    print("KERNEL_OK")
</pallas_src>

<mosaic_0001>
module attributes {stable_mosaic.version = 11 : i64} {
  func.func @_layernorm2d_kernel(%arg0: i32, %arg1: i32, %arg2: memref<2x4x256xf32, #tpu.memory_space<vmem>>, %arg3: memref<2x4x1xf32, #tpu.memory_space<vmem>>, %arg4: memref<2x4x256xf32, #tpu.memory_space<vmem>>) attributes {dimension_semantics = [#tpu.dimension_semantics<parallel>, #tpu.dimension_semantics<parallel>], iteration_bounds = array<i64: 1, 1>, scalar_prefetch = 0 : i64, scratch_operands = 0 : i64, tpu.core_type = #tpu.core_type<tc>, window_params = [{transform_indices = @transform_0, window_bounds = array<i64: 2, 4, 256>}, {pipeline_mode = #tpu.pipeline_mode<synchronous>, transform_indices = @transform_1, window_bounds = array<i64: 2, 4, 1>}, {transform_indices = @transform_2, window_bounds = array<i64: 2, 4, 256>}]} {
    %c0 = arith.constant 0 : index
    %c0_0 = arith.constant 0 : index
    %c0_1 = arith.constant 0 : index
    %0 = vector.load %arg2[%c0, %c0_0, %c0_1] : memref<2x4x256xf32, #tpu.memory_space<vmem>>, vector<2x4x256xf32>
    %cst = arith.constant dense<0.000000e+00> : vector<2x256xf32>
    %1 = vector.multi_reduction <add>, %0, %cst [1] : vector<2x4x256xf32> to vector<2x256xf32>
    %2 = vector.shape_cast %1 : vector<2x256xf32> to vector<2x1x256xf32>
    %cst_2 = arith.constant 4.000000e+00 : f32
    %3 = vector.broadcast %cst_2 : f32 to vector<2x1x256xf32>
    %4 = arith.divf %2, %3 : vector<2x1x256xf32>
    %5 = arith.mulf %0, %0 : vector<2x4x256xf32>
    %cst_3 = arith.constant dense<0.000000e+00> : vector<2x256xf32>
    %6 = vector.multi_reduction <add>, %5, %cst_3 [1] : vector<2x4x256xf32> to vector<2x256xf32>
    %7 = vector.shape_cast %6 : vector<2x256xf32> to vector<2x1x256xf32>
    %cst_4 = arith.constant 4.000000e+00 : f32
    %8 = vector.broadcast %cst_4 : f32 to vector<2x1x256xf32>
    %9 = arith.divf %7, %8 : vector<2x1x256xf32>
    %10 = arith.mulf %4, %4 : vector<2x1x256xf32>
    %11 = arith.subf %9, %10 : vector<2x1x256xf32>
    %cst_5 = arith.constant 0.000000e+00 : f32
    %12 = vector.broadcast %cst_5 : f32 to vector<2x1x256xf32>
    %13 = arith.maximumf %11, %12 : vector<2x1x256xf32>
    %cst_6 = arith.constant 9.99999997E-7 : f32
    %14 = vector.broadcast %cst_6 : f32 to vector<2x1x256xf32>
    %15 = arith.addf %13, %14 : vector<2x1x256xf32>
    %16 = math.rsqrt %15 : vector<2x1x256xf32>
    %c0_7 = arith.constant 0 : index
    %c0_8 = arith.constant 0 : index
    %c0_9 = arith.constant 0 : index
    %17 = vector.load %arg3[%c0_7, %c0_8, %c0_9] : memref<2x4x1xf32, #tpu.memory_space<vmem>>, vector<1x4x1xf32>
    %c1 = arith.constant 1 : index
    %c0_10 = arith.constant 0 : index
    %c0_11 = arith.constant 0 : index
    %18 = vector.load %arg3[%c1, %c0_10, %c0_11] : memref<2x4x1xf32, #tpu.memory_space<vmem>>, vector<1x4x1xf32>
    %19 = vector.broadcast %4 : vector<2x1x256xf32> to vector<2x4x256xf32>
    %20 = arith.subf %0, %19 : vector<2x4x256xf32>
    %21 = vector.broadcast %16 : vector<2x1x256xf32> to vector<2x4x256xf32>
    %22 = arith.mulf %20, %21 : vector<2x4x256xf32>
    %23 = vector.broadcast %17 : vector<1x4x1xf32> to vector<2x4x256xf32>
    %24 = arith.mulf %23, %22 : vector<2x4x256xf32>
    %25 = vector.broadcast %18 : vector<1x4x1xf32> to vector<2x4x256xf32>
    %26 = arith.addf %24, %25 : vector<2x4x256xf32>
    %c0_12 = arith.constant 0 : index
    %c0_13 = arith.constant 0 : index
    %c0_14 = arith.constant 0 : index
    %27 = vector.load %arg4[%c0_12, %c0_13, %c0_14] : memref<2x4x256xf32, #tpu.memory_space<vmem>>, vector<2x4x256xf32>
    tpu.vector_store %arg4[%c0_12, %c0_13, %c0_14], %26 {strides = array<i32>} : memref<2x4x256xf32, #tpu.memory_space<vmem>>, vector<2x4x256xf32>,
    return
  }
  func.func @transform_0(%arg0: i32, %arg1: i32) -> (i32, i32, i32) {
    %c0_i32 = arith.constant 0 : i32
    %c0_i32_0 = arith.constant 0 : i32
    return %arg0, %c0_i32, %arg1 : i32, i32, i32
  }
  func.func @transform_1(%arg0: i32, %arg1: i32) -> (i32, i32, i32) {
    %c0_i32 = arith.constant 0 : i32
    %c0_i32_0 = arith.constant 0 : i32
    %c0_i32_1 = arith.constant 0 : i32
    %c0_i32_2 = arith.constant 0 : i32
    return %c0_i32, %c0_i32_0, %c0_i32_1 : i32, i32, i32
  }
  func.func @transform_2(%arg0: i32, %arg1: i32) -> (i32, i32, i32) {
    %c0_i32 = arith.constant 0 : i32
    %c0_i32_0 = arith.constant 0 : i32
    return %arg0, %c0_i32, %arg1 : i32, i32, i32
  }
}

</mosaic_0001>

<bundles_post_ra>
// kernel: tpu_custom_call.1
= control target key start
LH: loop header
LB: loop body
LE: loop exit
PB: predicated region body
PF: predicated region fallthrough
CT: control target
= control target key end

     0   :  { %7 = vsyncpa [#allocation3], 0  ;;  %s347_s0 = inlined_call_operand.hbm [shape: f32[2,4,256], index: 0, kind: input, shape index: {}]   ;;  %s348_s1 = inlined_call_operand.vmem [shape: f32[2,4,1], index: 1, kind: input, shape index: {}]   ;;  %s349_s2 = inlined_call_operand.hbm [shape: f32[2,4,256], index: 2, kind: output, shape index: {}]  }
   0x1   :  { %8 = vsyncpa [#allocation4], 0  ;;  %s267_s9 = smov [#allocation2]   ;;  %s219_s13 = scalar_lea.hbm %s347_s0, 256 }
   0x2   :  { %s14_s10 = sshll.u32 %s267_s9, 4  ;;  %p220_p0 = scmp.ne.s32.totalorder %s347_s0, %s219_s13  ;;  %s15_s10 = int_to_ptr.vmem [resolvable:$true] %s14_s10 }
   0x3   :  { %p223_p1 = scmp.lt.u32.totalorder %s219_s13, %s347_s0 }
   0x5   :  { %p225_p2 = pnand %p223_p1, %p220_p0 }
   0x7   :  { %228 = shalt.err (!%p225_p2)
}
   0x8   :  { %s229_s18 = scalar_lea.vmem %s15_s10, 256  ;;  %p234_p4 = scmp.lt.s32.totalorder %s15_s10, %s15_s10 }
   0x9   :  { %p230_p3 = scmp.ne.s32.totalorder %s15_s10, %s229_s18  ;;  %p235_p5 = scmp.lt.s32.totalorder %s229_s18, %s229_s18 }
   0xb   :  { %p236_p6 = por %p235_p5, %p234_p4 }
   0xd   :  { %p237_p7 = pnand %p236_p6, %p230_p3 }
   0xf   :  { %240 = shalt.err (!%p237_p7)
}
  0x10   :  { %s268_s19 = smov 128   ;;  %s269_s20 = smov 8  }
  0x11   :  { %20 = dma.hbm_to_vmem [thread:$0]  %s347_s0, 256, %s15_s10, [#allocation3], %s268_s19, %s268_s19, %s269_s20  }
  0x12   :  { %263 = dma.done.wait [#allocation3], 256  }
  0x13   :  { %264 = vsyncadd [#allocation3], 4294967040  ;;  %v270_v0 = vmov 0   ;;  %v128_v1 = vld [vmem:[%s348_s1] sm:$0xf]  ;;  %v310_v4 = vld [vmem:[#allocation2 + $0x8] sm:$0xff] }
  0x14   :  { %208 = vset.pattern.permute.xlu0 %v270_v0  ;;  %v202_v2 = vld [vmem:[%s348_s1 + $0x4] sm:$0xf]  ;;  %vm34_vm0 = vcmask 1043456   ;;  %v31_v7 = vcombine.high %v310_v4, %v310_v4  ;;  %v69_v8 = vmul.f32 %v310_v4, %v310_v4  ;;  %s271_s0 = smov [#allocation5]  }
  0x15   :  { %153 = vperm.xlu0 %208, %v128_v1   ;;  %v308_v3 = vld [vmem:[#allocation2] sm:$0xff]  ;;  %v49_v12 = vsel %vm34_vm0, %v310_v4, 0.0  ;;  %s190_s1 = sshll.u32 %s271_s0, 4  ;;  %s191_s1 = int_to_ptr.vmem [resolvable:$true] %s190_s1 }
  0x16   :  { %v30_v5 = vcombine.high %v308_v3, %v308_v3  ;;  %v68_v6 = vmul.f32 %v308_v3, %v308_v3  ;;  %v35_v9 = vsel %vm34_vm0, %v308_v3, 0.0  ;;  %v56_v14 = vsel %vm34_vm0, %v31_v7, 0.0  ;;  %s241_s27 = scalar_lea.vmem %s191_s1, 256  ;;  %p246_p9 = scmp.lt.s32.totalorder %s191_s1, %s191_s1 }
  0x17   :  { %v36_v13 = vrot.slane %v35_v9, 4  ;;  %v73_v15 = vcombine.high %v69_v8, %v69_v8  ;;  %v50_v18 = vrot.slane %v49_v12, 4  ;;  %v57_v20 = vrot.slane %v56_v14, 4  ;;  %p242_p8 = scmp.ne.s32.totalorder %s191_s1, %s241_s27  ;;  %p247_p10 = scmp.lt.s32.totalorder %s241_s27, %s241_s27 }
  0x18   :  { %v42_v10 = vsel %vm34_vm0, %v30_v5, 0.0  ;;  %v72_v11 = vcombine.high %v68_v6, %v68_v6  ;;  %v76_v17 = vsel %vm34_vm0, %v68_v6, 0.0  ;;  %v90_v21 = vsel %vm34_vm0, %v69_v8, 0.0 }
  0x19   :  { %168 = vperm.xlu0 %208, %v202_v2   ;;  %v43_v16 = vrot.slane %v42_v10, 4  ;;  %v37_v22 = vadd.f32 %v36_v13, %v35_v9  ;;  %v77_v23 = vrot.slane %v76_v17, 4  ;;  %v97_v24 = vsel %vm34_vm0, %v73_v15, 0.0  ;;  %p248_p11 = por %p247_p10, %p246_p9 }
  0x1a   :  { %v83_v19 = vsel %vm34_vm0, %v72_v11, 0.0  ;;  %v51_v27 = vadd.f32 %v50_v18, %v49_v12  ;;  %v91_v28 = vrot.slane %v90_v21, 4  ;;  %v58_v29 = vadd.f32 %v57_v20, %v56_v14 }
  0x1b   :  { %v44_v25 = vadd.f32 %v43_v16, %v42_v10  ;;  %v84_v26 = vrot.slane %v83_v19, 4  ;;  %v98_v30 = vrot.slane %v97_v24, 4  ;;  %v38_v31 = vrot.slane %v37_v22, 2  ;;  %p249_p12 = pnand %p248_p11, %p242_p8 }
  0x1c   :  { %v78_v32 = vadd.f32 %v77_v23, %v76_v17  ;;  %v52_v35 = vrot.slane %v51_v27, 2  ;;  %v92_v36 = vadd.f32 %v91_v28, %v90_v21  ;;  %v59_v37 = vrot.slane %v58_v29, 2 }
  0x1d   :  { %v45_v33 = vrot.slane %v44_v25, 2  ;;  %v85_v34 = vadd.f32 %v84_v26, %v83_v19  ;;  %v99_v38 = vadd.f32 %v98_v30, %v97_v24  ;;  %v39_v39 = vadd.f32 %v38_v31, %v37_v22 }
  0x1e   :  { %v79_v40 = vrot.slane %v78_v32, 2  ;;  %v53_v43 = vadd.f32 %v52_v35, %v51_v27  ;;  %v93_v44 = vrot.slane %v92_v36, 2  ;;  %v60_v45 = vadd.f32 %v59_v37, %v58_v29 }
  0x1f   :  { %v46_v41 = vadd.f32 %v45_v33, %v44_v25  ;;  %v86_v42 = vrot.slane %v85_v34, 2  ;;  %v100_v46 = vrot.slane %v99_v38, 2  ;;  %v40_v47 = vrot.slane %v39_v39, 1 }
  0x20   :  { %v80_v48 = vadd.f32 %v79_v40, %v78_v32  ;;  %v54_v51 = vrot.slane %v53_v43, 1  ;;  %v94_v52 = vadd.f32 %v93_v44, %v92_v36  ;;  %v61_v53 = vrot.slane %v60_v45, 1 }
  0x21   :  { %v47_v49 = vrot.slane %v46_v41, 1  ;;  %v87_v50 = vadd.f32 %v86_v42, %v85_v34  ;;  %v101_v54 = vadd.f32 %v100_v46, %v99_v38  ;;  %v41_v55 = vadd.f32 %v40_v47, %v39_v39 }
  0x22   :  { %v81_v56 = vrot.slane %v80_v48, 1  ;;  %v55_v59 = vadd.f32 %v54_v51, %v53_v43  ;;  %v95_v60 = vrot.slane %v94_v52, 1  ;;  %v62_v61 = vadd.f32 %v61_v53, %v60_v45 }
  0x23   :  { %v48_v57 = vadd.f32 %v47_v49, %v46_v41  ;;  %v88_v58 = vrot.slane %v87_v50, 1  ;;  %v102_v62 = vrot.slane %v101_v54, 1  ;;  %v64_v63 = vmul.f32 0.25, %v41_v55 }
  0x24   :  { %v82_v0 = vadd.f32 %v81_v56, %v80_v48  ;;  %v66_v5 = vmul.f32 0.25, %v55_v59  ;;  %v96_v6 = vadd.f32 %v95_v60, %v94_v52  ;;  %v67_v7 = vmul.f32 0.25, %v62_v61 }
  0x25   :  { %v65_v1 = vmul.f32 0.25, %v48_v57  ;;  %v89_v2 = vadd.f32 %v88_v58, %v87_v50  ;;  %v103_v8 = vadd.f32 %v102_v62, %v101_v54  ;;  %v108_v10 = vmul.f32 %v64_v63, %v64_v63 }
  0x26   :  { %v104_v9 = vmul.f32 0.25, %v82_v0  ;;  %v106_v13 = vmul.f32 0.25, %v96_v6  ;;  %v110_v14 = vmul.f32 %v66_v5, %v66_v5  ;;  %v111_v16 = vmul.f32 %v67_v7, %v67_v7 }
  0x27   :  { %v105_v11 = vmul.f32 0.25, %v89_v2  ;;  %v109_v12 = vmul.f32 %v65_v1, %v65_v1  ;;  %v107_v15 = vmul.f32 0.25, %v103_v8  ;;  %v135_v32 = vcombine.low %v64_v63, %v65_v1 }
  0x28   :  { %v112_v17 = vsub.f32 %v104_v9, %v108_v10  ;;  %v114_v19 = vsub.f32 %v106_v13, %v110_v14  ;;  %v136_v33 = vcombine.low %v66_v5, %v67_v7 }
  0x29   :  { %v113_v18 = vsub.f32 %v105_v11, %v109_v12  ;;  %v115_v20 = vsub.f32 %v107_v15, %v111_v16  ;;  %v139_v35 = vsub.f32 %v308_v3, %v135_v32 }
  0x2a   :  { %v116_v21 = vmax.f32 %v112_v17, 0.0  ;;  %v118_v23 = vmax.f32 %v114_v19, 0.0  ;;  %v140_v36 = vsub.f32 %v310_v4, %v136_v33 }
  0x2b   :  { %v117_v22 = vmax.f32 %v113_v18, 0.0  ;;  %v119_v24 = vmax.f32 %v115_v20, 0.0 }
  0x2c   :  { %v120_v25 = vadd.f32 1e-06, %v116_v21  ;;  %v122_v27 = vadd.f32 1e-06, %v118_v23 }
  0x2d   :  { %v121_v26 = vadd.f32 1e-06, %v117_v22  ;;  %v123_v28 = vadd.f32 1e-06, %v119_v24 }
  0x2e   :  { %211 = vrsqrt.f32 %v120_v25 }
  0x2f   :  { %213 = vrsqrt.f32 %v121_v26 }
  0x30   :  { %215 = vrsqrt.f32 %v122_v27 }
  0x31   :  { %217 = vrsqrt.f32 %v123_v28 }
  0x38   :  { %v212_v29 = vpop.eup %211 }
  0x39   :  { %v214_v30 = vpop.eup %213 }
  0x3a   :  { %v216_v31 = vpop.eup %215  ;;  %v145_v37 = vcombine.low %v212_v29, %v214_v30 }
  0x3b   :  { %v218_v34 = vpop.eup %217 }
  0x3c   :  { %v146_v38 = vcombine.low %v216_v31, %v218_v34  ;;  %v149_v39 = vmul.f32 %v145_v37, %v139_v35 }
  0x3e   :  { %v150_v40 = vmul.f32 %v146_v38, %v140_v36  ;;  %v158_v41 = vcombine.high %v149_v39, %v149_v39 }
  0x40   :  { %v159_v42 = vcombine.high %v150_v40, %v150_v40 }
  0x94   :  { %v154_v43 = vpop.permute.xlu0 %153 }
  0x95   :  { %v162_v44 = vmul.f32 %v154_v43, %v149_v39  ;;  %v163_v45 = vmul.f32 %v158_v41, %v154_v43  ;;  %v164_v46 = vmul.f32 %v154_v43, %v150_v40  ;;  %v165_v47 = vmul.f32 %v159_v42, %v154_v43 }
  0x98   :  { %v169_v48 = vpop.permute.xlu0 %168 }
  0x99   :  { %v171_v49 = vadd.f32 %v169_v48, %v162_v44  ;;  %v172_v50 = vadd.f32 %v169_v48, %v163_v45  ;;  %v173_v51 = vadd.f32 %v169_v48, %v164_v46  ;;  %v174_v3 = vadd.f32 %v169_v48, %v165_v47 }
  0x9b   :  { %v179_v52 = vcombine.low %v171_v49, %v172_v50  ;;  %v180_v4 = vcombine.low %v173_v51, %v174_v3 }
  0x9d   :  { %183 = vst [vmem:[#allocation5] sm:$0xff] %v179_v52  ;;  %184 = vst [vmem:[#allocation5 + $0x8] sm:$0xff] %v180_v4 }
  0x9e   :  { %252 = shalt.err (!%p249_p12)
}
  0x9f   :  { %s253_s30 = scalar_lea.hbm %s349_s2, 256 }
  0xa0   :  { %p254_p13 = scmp.ne.s32.totalorder %s349_s2, %s253_s30  ;;  %p257_p0 = scmp.lt.u32.totalorder %s253_s30, %s349_s2 }
  0xa2   :  { %p259_p1 = pnand %p257_p0, %p254_p13 }
  0xa4   :  { %262 = shalt.err (!%p259_p1)
}
  0xa5   :  { %196 = dma.vmem_to_hbm [thread:$0]  %s191_s1, 256, %s349_s2, [#allocation4], %s268_s19, %s268_s19, %s269_s20  }
  0xa6   :  { %265 = dma.done.wait [#allocation4], 256  }
  0xa7   :  { %266 = vsyncadd [#allocation4], 4294967040 }
  0xa8   :  { %200 = vsyncpa [#allocation3], 1 }
  0xa9   :  { %201 = vsyncpa [#allocation4], 1 }

</bundles_post_ra>
